<compile_context>
chip_gen: v7x
topology: tpu7x:2x2x1
jax: 0.10.0
libtpu: 0.0.40
codegen_flags: <defaults>
</compile_context>

<pallas_src>
import math
import functools

import jax
import jax.numpy as jnp
from jax import lax
from jax.experimental import pallas as pl
from jax.experimental.pallas import tpu as pltpu


# ------------------------------ tile helpers -------------------------------- #

def _choose_tile(dim, preferred, align):
    """Largest multiple of `align` that divides `dim`, capped at `preferred`."""
    if dim <= preferred:
        return dim
    t = (preferred // align) * align
    while t >= align:
        if dim % t == 0:
            return t
        t -= align
    # TODO(synk): awkward (prime-ish) dims fall back to one full-size tile.
    return dim


# ----------------------------- Pallas kernel -------------------------------- #

_CONTRACT_LAST = (((1,), (1,)), ((), ()))  # a:(m,k) . b:(n,k) -> (m,n), no b.T


def _mha_fused_kernel(xq_ref, xk_ref, xv_ref,
                      wq_ref, wk_ref, wv_ref,
                      bq_ref, bk_ref, bv_ref,
                      woT_ref, bo_ref,
                      o_ref, acc_ref, *, scale):
    """One grid step = (batch b, query block qi, head h).

    xq: (tq, E) query slab, xk/xv: (S, E) key/value slabs (resident per batch).
    wq/wk/wv: (Dh, E) per-head weights in PyTorch (out, in) layout, bf16.
    woT: (Dh, E) per-head slab of Wo^T, bf16.  Biases f32.
    The output projection is fused: each head adds its (tq, E) contribution to
    the f32 accumulator; the result is written once at the last head.
    """
    h = pl.program_id(2)

    @pl.when(h == 0)
    def _():
        acc_ref[...] = jnp.zeros_like(acc_ref)

    # Activations arrive f32 from HBM; cast to bf16 for the MXU, accumulate f32.
    xq = xq_ref[...].astype(jnp.bfloat16)        # (tq, E)
    xk = xk_ref[...].astype(jnp.bfloat16)        # (S,  E)
    xv = xv_ref[...].astype(jnp.bfloat16)        # (S,  E)

    # Per-head input projections (contract the E axis of both operands).
    q = lax.dot_general(xq, wq_ref[...], _CONTRACT_LAST,
                        preferred_element_type=jnp.float32) + bq_ref[...]    # (tq, Dh)
    k = lax.dot_general(xk, wk_ref[...], _CONTRACT_LAST,
                        preferred_element_type=jnp.float32) + bk_ref[...]    # (S, Dh)
    v = lax.dot_general(xv, wv_ref[...], _CONTRACT_LAST,
                        preferred_element_type=jnp.float32) + bv_ref[...]    # (S, Dh)

    # Scaled dot-product attention; softmax math kept in f32 (v5e: no bf16 VPU/EUP).
    q = q * scale                                           # 1/sqrt(Dh) folded into q
    s = lax.dot_general(q.astype(jnp.bfloat16), k.astype(jnp.bfloat16),
                        _CONTRACT_LAST, preferred_element_type=jnp.float32)  # (tq, S)
    s = s - jnp.max(s, axis=-1, keepdims=True)
    p = jnp.exp(s)
    p = p * pl.reciprocal(jnp.sum(p, axis=-1, keepdims=True), approx=True)
    attn = jnp.dot(p.astype(jnp.bfloat16), v.astype(jnp.bfloat16),
                   preferred_element_type=jnp.float32)                       # (tq, Dh)

    # Fused output projection: this head's lane-dense (tq, E) contribution.
    acc_ref[...] += jnp.dot(attn.astype(jnp.bfloat16), woT_ref[...],
                            preferred_element_type=jnp.float32)

    @pl.when(h == pl.num_programs(2) - 1)
    def _():
        o_ref[...] = (acc_ref[...] + bo_ref[...]).astype(o_ref.dtype)


# ------------------------------ JAX wrapper --------------------------------- #

def multi_headed_attention(query, key, value, params, num_heads):
    """Forward pass of MultiHeadedAttention.

    query/key/value: (S, B, E) float32.
    params: dict with wq,bq,wk,bk,wv,bv,wo,bo (PyTorch nn.Linear layout: W is (out,in)).
    """
    S, B, E = query.shape
    H = num_heads
    assert E % H == 0
    Dh = E // H
    # Batch selects a 128-aligned column block of the free (S, B*E) view.
    assert B == 1 or E % 128 == 0, "TODO(synk): E % 128 != 0 with B > 1 unsupported"

    tq = _choose_tile(S, 256, 8)
    n_q = S // tq

    # Free reshapes only — no activation transposes / extra HBM passes.
    xq2 = query.reshape(S, B * E)
    xk2 = key.reshape(S, B * E)
    xv2 = value.reshape(S, B * E)

    bf16, f32 = jnp.bfloat16, jnp.float32
    # Head-major weight slabs; Wo is transposed once (small (E,E) weight).
    wq3 = params["wq"].reshape(H, Dh, E).astype(bf16)
    wk3 = params["wk"].reshape(H, Dh, E).astype(bf16)
    wv3 = params["wv"].reshape(H, Dh, E).astype(bf16)
    woT3 = params["wo"].T.reshape(H, Dh, E).astype(bf16)
    bq3 = params["bq"].reshape(H, 1, Dh).astype(f32)
    bk3 = params["bk"].reshape(H, 1, Dh).astype(f32)
    bv3 = params["bv"].reshape(H, 1, Dh).astype(f32)
    bo2 = params["bo"].reshape(1, E).astype(f32)

    # Explicit VMEM budget from the actual tile footprint (double-buffered I/O).
    footprint = (2 * tq * E * 4            # xq blocks (f32)
                 + 2 * 2 * S * E * 4       # xk, xv blocks (f32)
                 + 2 * 4 * Dh * E * 2      # wq/wk/wv/woT per-head slabs (bf16)
                 + 2 * 3 * Dh * 4          # per-head biases
                 + 2 * E * 4               # output bias
                 + 2 * tq * E * 4          # output blocks
                 + tq * E * 4)             # f32 accumulator scratch
    vmem_limit = int(min(48 * 2**20, max(16 * 2**20, 2 * footprint)))

    grid = (B, n_q, H)  # H last: reduction axis of the fused output projection

    out = pl.pallas_call(
        functools.partial(_mha_fused_kernel, scale=1.0 / math.sqrt(Dh)),
        out_shape=jax.ShapeDtypeStruct((S, B * E), jnp.float32),
        grid=grid,
        in_specs=[
            pl.BlockSpec((tq, E), lambda b, qi, h: (qi, b)),          # xq
            pl.BlockSpec((S, E), lambda b, qi, h: (0, b)),            # xk (full seq)
            pl.BlockSpec((S, E), lambda b, qi, h: (0, b)),            # xv (full seq)
            pl.BlockSpec((None, Dh, E), lambda b, qi, h: (h, 0, 0)),  # wq[h]
            pl.BlockSpec((None, Dh, E), lambda b, qi, h: (h, 0, 0)),  # wk[h]
            pl.BlockSpec((None, Dh, E), lambda b, qi, h: (h, 0, 0)),  # wv[h]
            pl.BlockSpec((None, 1, Dh), lambda b, qi, h: (h, 0, 0)),  # bq[h]
            pl.BlockSpec((None, 1, Dh), lambda b, qi, h: (h, 0, 0)),  # bk[h]
            pl.BlockSpec((None, 1, Dh), lambda b, qi, h: (h, 0, 0)),  # bv[h]
            pl.BlockSpec((None, Dh, E), lambda b, qi, h: (h, 0, 0)),  # Wo^T[h]
            pl.BlockSpec((1, E), lambda b, qi, h: (0, 0)),            # bo
        ],
        out_specs=pl.BlockSpec((tq, E), lambda b, qi, h: (qi, b)),
        scratch_shapes=[pltpu.VMEM((tq, E), jnp.float32)],
        compiler_params=pltpu.CompilerParams(
            dimension_semantics=("parallel", "parallel", "arbitrary"),
            vmem_limit_bytes=vmem_limit),
    )(xq2, xk2, xv2, wq3, wk3, wv3, bq3, bk3, bv3, woT3, bo2)

    return out.reshape(S, B, E)


# ------------------------------ reference ----------------------------------- #

def _reference(query, key, value, params, num_heads):
    S, B, E = query.shape
    H = num_heads
    Dh = E // H

    def lin(x, w, b):
        return x @ w.T + b

    qp = lin(query, params["wq"], params["bq"]).reshape(S, B, H, Dh)
    kp = lin(key, params["wk"], params["bk"]).reshape(S, B, H, Dh)
    vp = lin(value, params["wv"], params["bv"]).reshape(S, B, H, Dh)

    scores = jnp.einsum("sbhd,tbhd->sbht", qp, kp) / math.sqrt(Dh)
    p = jax.nn.softmax(scores, axis=-1)
    attn = jnp.einsum("sbht,tbhd->sbhd", p, vp).reshape(S, B, E)
    return lin(attn, params["wo"], params["bo"])


# --------------------------------- main -------------------------------------- #

if __name__ == "__main__":
    SEQ, BATCH, EMBED, HEADS = 8, 2, 128, 4  # input_size=128, num_heads=4 (Dh=32)

    key0 = jax.random.PRNGKey(0)
    keys = jax.random.split(key0, 12)

    bound = 1.0 / math.sqrt(EMBED)  # PyTorch nn.Linear default init bound

    def uni(k, shape):
        return jax.random.uniform(k, shape, jnp.float32, -bound, bound)

    params = {
        "wq": uni(keys[0], (EMBED, EMBED)), "bq": uni(keys[1], (EMBED,)),
        "wk": uni(keys[2], (EMBED, EMBED)), "bk": uni(keys[3], (EMBED,)),
        "wv": uni(keys[4], (EMBED, EMBED)), "bv": uni(keys[5], (EMBED,)),
        "wo": uni(keys[6], (EMBED, EMBED)), "bo": uni(keys[7], (EMBED,)),
    }

    query = jax.random.normal(keys[8], (SEQ, BATCH, EMBED), jnp.float32)
    key_in = jax.random.normal(keys[9], (SEQ, BATCH, EMBED), jnp.float32)
    value = jax.random.normal(keys[10], (SEQ, BATCH, EMBED), jnp.float32)

    out = multi_headed_attention(query, key_in, value, params, HEADS)
    out = jax.block_until_ready(out)

    ref = _reference(query, key_in, value, params, HEADS)
    assert out.shape == (SEQ, BATCH, EMBED)
    # bf16 MXU matmuls (f32 accumulation) + EUP approx reciprocal -> ~1e-2 error.
    assert jnp.allclose(out, ref, atol=3e-2, rtol=3e-2), "mismatch vs reference"

    print("KERNEL_OK")
</pallas_src>

<mosaic_0001>
module attributes {stable_mosaic.version = 11 : i64} {
  func.func @_mha_fused_kernel(%arg0: i32, %arg1: i32, %arg2: i32, %arg3: memref<8x128xf32, #tpu.memory_space<vmem>>, %arg4: memref<8x128xf32, #tpu.memory_space<vmem>>, %arg5: memref<8x128xf32, #tpu.memory_space<vmem>>, %arg6: memref<1x32x128xbf16, #tpu.memory_space<vmem>>, %arg7: memref<1x32x128xbf16, #tpu.memory_space<vmem>>, %arg8: memref<1x32x128xbf16, #tpu.memory_space<vmem>>, %arg9: memref<1x1x32xf32, #tpu.memory_space<vmem>>, %arg10: memref<1x1x32xf32, #tpu.memory_space<vmem>>, %arg11: memref<1x1x32xf32, #tpu.memory_space<vmem>>, %arg12: memref<1x32x128xbf16, #tpu.memory_space<vmem>>, %arg13: memref<1x128xf32, #tpu.memory_space<vmem>>, %arg14: memref<8x128xf32, #tpu.memory_space<vmem>>, %arg15: memref<8x128xf32, #tpu.memory_space<vmem>>) attributes {dimension_semantics = [#tpu.dimension_semantics<parallel>, #tpu.dimension_semantics<parallel>, #tpu.dimension_semantics<arbitrary>], iteration_bounds = array<i64: 2, 1, 4>, scalar_prefetch = 0 : i64, scratch_operands = 1 : i64, tpu.core_type = #tpu.core_type<tc>, window_params = [{transform_indices = @transform_0, window_bounds = array<i64: 8, 128>}, {transform_indices = @transform_1, window_bounds = array<i64: 8, 128>}, {transform_indices = @transform_2, window_bounds = array<i64: 8, 128>}, {transform_indices = @transform_3, window_bounds = array<i64: 1, 32, 128>}, {transform_indices = @transform_4, window_bounds = array<i64: 1, 32, 128>}, {transform_indices = @transform_5, window_bounds = array<i64: 1, 32, 128>}, {transform_indices = @transform_6, window_bounds = array<i64: 1, 1, 32>}, {transform_indices = @transform_7, window_bounds = array<i64: 1, 1, 32>}, {transform_indices = @transform_8, window_bounds = array<i64: 1, 1, 32>}, {transform_indices = @transform_9, window_bounds = array<i64: 1, 32, 128>}, {pipeline_mode = #tpu.pipeline_mode<synchronous>, transform_indices = @transform_10, window_bounds = array<i64: 1, 128>}, {transform_indices = @transform_11, window_bounds = array<i64: 8, 128>}]} {
    %c0_i32 = arith.constant 0 : i32
    %0 = arith.cmpi eq, %arg2, %c0_i32 : i32
    %1 = arith.extui %0 : i1 to i32
    %c0_i32_0 = arith.constant 0 : i32
    %2 = arith.cmpi ne, %1, %c0_i32_0 : i32
    scf.if %2 {
      %cst_40 = arith.constant 0.000000e+00 : f32
      %58 = vector.broadcast %cst_40 : f32 to vector<8x128xf32>
      %c0_41 = arith.constant 0 : index
      %c0_42 = arith.constant 0 : index
      %59 = vector.load %arg15[%c0_41, %c0_42] : memref<8x128xf32, #tpu.memory_space<vmem>>, vector<8x128xf32>
      tpu.vector_store %arg15[%c0_41, %c0_42], %58 {strides = array<i32>} : memref<8x128xf32, #tpu.memory_space<vmem>>, vector<8x128xf32>,
    } else {
    }
    %c0 = arith.constant 0 : index
    %c0_1 = arith.constant 0 : index
    %3 = vector.load %arg3[%c0, %c0_1] : memref<8x128xf32, #tpu.memory_space<vmem>>, vector<8x128xf32>
    %4 = arith.truncf %3 : vector<8x128xf32> to vector<8x128xbf16>
    %c0_2 = arith.constant 0 : index
    %c0_3 = arith.constant 0 : index
    %5 = vector.load %arg4[%c0_2, %c0_3] : memref<8x128xf32, #tpu.memory_space<vmem>>, vector<8x128xf32>
    %6 = arith.truncf %5 : vector<8x128xf32> to vector<8x128xbf16>
    %c0_4 = arith.constant 0 : index
    %c0_5 = arith.constant 0 : index
    %7 = vector.load %arg5[%c0_4, %c0_5] : memref<8x128xf32, #tpu.memory_space<vmem>>, vector<8x128xf32>
    %8 = arith.truncf %7 : vector<8x128xf32> to vector<8x128xbf16>
    %c0_6 = arith.constant 0 : index
    %c0_7 = arith.constant 0 : index
    %c0_8 = arith.constant 0 : index
    %9 = vector.load %arg6[%c0_6, %c0_7, %c0_8] : memref<1x32x128xbf16, #tpu.memory_space<vmem>>, vector<1x32x128xbf16>
    %10 = vector.shape_cast %9 : vector<1x32x128xbf16> to vector<32x128xbf16>
    %cst = arith.constant dense<0.000000e+00> : vector<8x32xf32>
    %11 = tpu.matmul %4, %10, %cst {dimension_numbers = #tpu.dot_dimension_numbers<[1], [1], [0], [0], [0, 0, 1, 0], [], []>} : vector<8x128xbf16>, vector<32x128xbf16>, vector<8x32xf32> -> vector<8x32xf32>
    %c0_9 = arith.constant 0 : index
    %c0_10 = arith.constant 0 : index
    %c0_11 = arith.constant 0 : index
    %12 = vector.load %arg9[%c0_9, %c0_10, %c0_11] : memref<1x1x32xf32, #tpu.memory_space<vmem>>, vector<1x1x32xf32>
    %13 = vector.shape_cast %12 : vector<1x1x32xf32> to vector<1x32xf32>
    %14 = vector.broadcast %13 : vector<1x32xf32> to vector<8x32xf32>
    %15 = arith.addf %11, %14 : vector<8x32xf32>
    %c0_12 = arith.constant 0 : index
    %c0_13 = arith.constant 0 : index
    %c0_14 = arith.constant 0 : index
    %16 = vector.load %arg7[%c0_12, %c0_13, %c0_14] : memref<1x32x128xbf16, #tpu.memory_space<vmem>>, vector<1x32x128xbf16>
    %17 = vector.shape_cast %16 : vector<1x32x128xbf16> to vector<32x128xbf16>
    %cst_15 = arith.constant dense<0.000000e+00> : vector<8x32xf32>
    %18 = tpu.matmul %6, %17, %cst_15 {dimension_numbers = #tpu.dot_dimension_numbers<[1], [1], [0], [0], [0, 0, 1, 0], [], []>} : vector<8x128xbf16>, vector<32x128xbf16>, vector<8x32xf32> -> vector<8x32xf32>
    %c0_16 = arith.constant 0 : index
    %c0_17 = arith.constant 0 : index
    %c0_18 = arith.constant 0 : index
    %19 = vector.load %arg10[%c0_16, %c0_17, %c0_18] : memref<1x1x32xf32, #tpu.memory_space<vmem>>, vector<1x1x32xf32>
    %20 = vector.shape_cast %19 : vector<1x1x32xf32> to vector<1x32xf32>
    %21 = vector.broadcast %20 : vector<1x32xf32> to vector<8x32xf32>
    %22 = arith.addf %18, %21 : vector<8x32xf32>
    %c0_19 = arith.constant 0 : index
    %c0_20 = arith.constant 0 : index
    %c0_21 = arith.constant 0 : index
    %23 = vector.load %arg8[%c0_19, %c0_20, %c0_21] : memref<1x32x128xbf16, #tpu.memory_space<vmem>>, vector<1x32x128xbf16>
    %24 = vector.shape_cast %23 : vector<1x32x128xbf16> to vector<32x128xbf16>
    %cst_22 = arith.constant dense<0.000000e+00> : vector<8x32xf32>
    %25 = tpu.matmul %8, %24, %cst_22 {dimension_numbers = #tpu.dot_dimension_numbers<[1], [1], [0], [0], [0, 0, 1, 0], [], []>} : vector<8x128xbf16>, vector<32x128xbf16>, vector<8x32xf32> -> vector<8x32xf32>
    %c0_23 = arith.constant 0 : index
    %c0_24 = arith.constant 0 : index
    %c0_25 = arith.constant 0 : index
    %26 = vector.load %arg11[%c0_23, %c0_24, %c0_25] : memref<1x1x32xf32, #tpu.memory_space<vmem>>, vector<1x1x32xf32>
    %27 = vector.shape_cast %26 : vector<1x1x32xf32> to vector<1x32xf32>
    %28 = vector.broadcast %27 : vector<1x32xf32> to vector<8x32xf32>
    %29 = arith.addf %25, %28 : vector<8x32xf32>
    %cst_26 = arith.constant 0.176776692 : f32
    %30 = vector.broadcast %cst_26 : f32 to vector<8x32xf32>
    %31 = arith.mulf %15, %30 : vector<8x32xf32>
    %32 = arith.truncf %31 : vector<8x32xf32> to vector<8x32xbf16>
    %33 = arith.truncf %22 : vector<8x32xf32> to vector<8x32xbf16>
    %cst_27 = arith.constant dense<0.000000e+00> : vector<8x8xf32>
    %34 = tpu.matmul %32, %33, %cst_27 {dimension_numbers = #tpu.dot_dimension_numbers<[1], [1], [0], [0], [0, 0, 1, 0], [], []>} : vector<8x32xbf16>, vector<8x32xbf16>, vector<8x8xf32> -> vector<8x8xf32>
    %cst_28 = arith.constant dense<0xFF800000> : vector<8xf32>
    %35 = vector.multi_reduction <maximumf>, %34, %cst_28 [1] : vector<8x8xf32> to vector<8xf32>
    %36 = vector.shape_cast %35 : vector<8xf32> to vector<8x1xf32>
    %37 = vector.broadcast %36 : vector<8x1xf32> to vector<8x8xf32>
    %38 = arith.subf %34, %37 : vector<8x8xf32>
    %39 = math.exp %38 : vector<8x8xf32>
    %cst_29 = arith.constant dense<0.000000e+00> : vector<8xf32>
    %40 = vector.multi_reduction <add>, %39, %cst_29 [1] : vector<8x8xf32> to vector<8xf32>
    %41 = vector.shape_cast %40 : vector<8xf32> to vector<8x1xf32>
    %42 = tpu.reciprocal %41 {approx = true} : vector<8x1xf32> -> vector<8x1xf32>
    %43 = vector.broadcast %42 : vector<8x1xf32> to vector<8x8xf32>
    %44 = arith.mulf %39, %43 : vector<8x8xf32>
    %45 = arith.truncf %44 : vector<8x8xf32> to vector<8x8xbf16>
    %46 = arith.truncf %29 : vector<8x32xf32> to vector<8x32xbf16>
    %cst_30 = arith.constant dense<0.000000e+00> : vector<8x32xf32>
    %47 = tpu.matmul %45, %46, %cst_30 {dimension_numbers = #tpu.dot_dimension_numbers<[1], [0], [0], [1], [0, 0, 1, 1], [], []>} : vector<8x8xbf16>, vector<8x32xbf16>, vector<8x32xf32> -> vector<8x32xf32>
    %c0_31 = arith.constant 0 : index
    %c0_32 = arith.constant 0 : index
    %48 = vector.load %arg15[%c0_31, %c0_32] : memref<8x128xf32, #tpu.memory_space<vmem>>, vector<8x128xf32>
    %49 = arith.truncf %47 : vector<8x32xf32> to vector<8x32xbf16>
    %c0_33 = arith.constant 0 : index
    %c0_34 = arith.constant 0 : index
    %c0_35 = arith.constant 0 : index
    %50 = vector.load %arg12[%c0_33, %c0_34, %c0_35] : memref<1x32x128xbf16, #tpu.memory_space<vmem>>, vector<1x32x128xbf16>
    %51 = vector.shape_cast %50 : vector<1x32x128xbf16> to vector<32x128xbf16>
    %cst_36 = arith.constant dense<0.000000e+00> : vector<8x128xf32>
    %52 = tpu.matmul %49, %51, %cst_36 {dimension_numbers = #tpu.dot_dimension_numbers<[1], [0], [0], [1], [0, 0, 1, 1], [], []>} : vector<8x32xbf16>, vector<32x128xbf16>, vector<8x128xf32> -> vector<8x128xf32>
    %53 = arith.addf %48, %52 : vector<8x128xf32>
    %c0_37 = arith.constant 0 : index
    %c0_38 = arith.constant 0 : index
    %54 = vector.load %arg15[%c0_37, %c0_38] : memref<8x128xf32, #tpu.memory_space<vmem>>, vector<8x128xf32>
    tpu.vector_store %arg15[%c0_37, %c0_38], %53 {strides = array<i32>} : memref<8x128xf32, #tpu.memory_space<vmem>>, vector<8x128xf32>,
    %c3_i32 = arith.constant 3 : i32
    %55 = arith.cmpi eq, %arg2, %c3_i32 : i32
    %56 = arith.extui %55 : i1 to i32
    %c0_i32_39 = arith.constant 0 : i32
    %57 = arith.cmpi ne, %56, %c0_i32_39 : i32
    scf.if %57 {
      %c0_40 = arith.constant 0 : index
      %c0_41 = arith.constant 0 : index
      %58 = vector.load %arg15[%c0_40, %c0_41] : memref<8x128xf32, #tpu.memory_space<vmem>>, vector<8x128xf32>
      %c0_42 = arith.constant 0 : index
      %c0_43 = arith.constant 0 : index
      %59 = vector.load %arg13[%c0_42, %c0_43] : memref<1x128xf32, #tpu.memory_space<vmem>>, vector<1x128xf32>
      %60 = vector.broadcast %59 : vector<1x128xf32> to vector<8x128xf32>
      %61 = arith.addf %58, %60 : vector<8x128xf32>
      %c0_44 = arith.constant 0 : index
      %c0_45 = arith.constant 0 : index
      %62 = vector.load %arg14[%c0_44, %c0_45] : memref<8x128xf32, #tpu.memory_space<vmem>>, vector<8x128xf32>
      tpu.vector_store %arg14[%c0_44, %c0_45], %61 {strides = array<i32>} : memref<8x128xf32, #tpu.memory_space<vmem>>, vector<8x128xf32>,
    } else {
    }
    return
  }
  func.func @transform_0(%arg0: i32, %arg1: i32, %arg2: i32) -> (i32, i32) {
    %c0_i32 = arith.constant 0 : i32
    return %arg1, %arg0 : i32, i32
  }
  func.func @transform_1(%arg0: i32, %arg1: i32, %arg2: i32) -> (i32, i32) {
    %c0_i32 = arith.constant 0 : i32
    %c0_i32_0 = arith.constant 0 : i32
    return %c0_i32, %arg0 : i32, i32
  }
  func.func @transform_2(%arg0: i32, %arg1: i32, %arg2: i32) -> (i32, i32) {
    %c0_i32 = arith.constant 0 : i32
    %c0_i32_0 = arith.constant 0 : i32
    return %c0_i32, %arg0 : i32, i32
  }
  func.func @transform_3(%arg0: i32, %arg1: i32, %arg2: i32) -> (i32, i32, i32) {
    %c0_i32 = arith.constant 0 : i32
    %c0_i32_0 = arith.constant 0 : i32
    %c0_i32_1 = arith.constant 0 : i32
    return %arg2, %c0_i32, %c0_i32_0 : i32, i32, i32
  }
  func.func @transform_4(%arg0: i32, %arg1: i32, %arg2: i32) -> (i32, i32, i32) {
    %c0_i32 = arith.constant 0 : i32
    %c0_i32_0 = arith.constant 0 : i32
    %c0_i32_1 = arith.constant 0 : i32
    return %arg2, %c0_i32, %c0_i32_0 : i32, i32, i32
  }
  func.func @transform_5(%arg0: i32, %arg1: i32, %arg2: i32) -> (i32, i32, i32) {
    %c0_i32 = arith.constant 0 : i32
    %c0_i32_0 = arith.constant 0 : i32
    %c0_i32_1 = arith.constant 0 : i32
    return %arg2, %c0_i32, %c0_i32_0 : i32, i32, i32
  }
  func.func @transform_6(%arg0: i32, %arg1: i32, %arg2: i32) -> (i32, i32, i32) {
    %c0_i32 = arith.constant 0 : i32
    %c0_i32_0 = arith.constant 0 : i32
    %c0_i32_1 = arith.constant 0 : i32
    return %arg2, %c0_i32, %c0_i32_0 : i32, i32, i32
  }
  func.func @transform_7(%arg0: i32, %arg1: i32, %arg2: i32) -> (i32, i32, i32) {
    %c0_i32 = arith.constant 0 : i32
    %c0_i32_0 = arith.constant 0 : i32
    %c0_i32_1 = arith.constant 0 : i32
    return %arg2, %c0_i32, %c0_i32_0 : i32, i32, i32
  }
  func.func @transform_8(%arg0: i32, %arg1: i32, %arg2: i32) -> (i32, i32, i32) {
    %c0_i32 = arith.constant 0 : i32
    %c0_i32_0 = arith.constant 0 : i32
    %c0_i32_1 = arith.constant 0 : i32
    return %arg2, %c0_i32, %c0_i32_0 : i32, i32, i32
  }
  func.func @transform_9(%arg0: i32, %arg1: i32, %arg2: i32) -> (i32, i32, i32) {
    %c0_i32 = arith.constant 0 : i32
    %c0_i32_0 = arith.constant 0 : i32
    %c0_i32_1 = arith.constant 0 : i32
    return %arg2, %c0_i32, %c0_i32_0 : i32, i32, i32
  }
  func.func @transform_10(%arg0: i32, %arg1: i32, %arg2: i32) -> (i32, i32) {
    %c0_i32 = arith.constant 0 : i32
    %c0_i32_0 = arith.constant 0 : i32
    %c0_i32_1 = arith.constant 0 : i32
    return %c0_i32, %c0_i32_0 : i32, i32
  }
  func.func @transform_11(%arg0: i32, %arg1: i32, %arg2: i32) -> (i32, i32) {
    %c0_i32 = arith.constant 0 : i32
    return %arg1, %arg0 : i32, i32
  }
}

</mosaic_0001>

<bundles_post_ra>
// kernel: tpu_custom_call.1
= control target key start
LH: loop header
LB: loop body
LE: loop exit
PB: predicated region body
PF: predicated region fallthrough
CT: control target
= control target key end

     0   :  { %s2629_s0 = inlined_call_operand.hbm [shape: f32[8,256], index: 0, kind: input, shape index: {}]   ;;  %s2630_s1 = inlined_call_operand.hbm [shape: f32[8,256], index: 1, kind: input, shape index: {}]   ;;  %s2631_s2 = inlined_call_operand.hbm [shape: f32[8,256], index: 2, kind: input, shape index: {}]   ;;  %s2632_s3 = inlined_call_operand.hbm [shape: bf16[4,32,128], index: 3, kind: input, shape index: {}]   ;;  %s2633_s4 = inlined_call_operand.hbm [shape: bf16[4,32,128], index: 4, kind: input, shape index: {}]   ;;  %s2634_s5 = inlined_call_operand.hbm [shape: bf16[4,32,128], index: 5, kind: input, shape index: {}]   ;;  %s2635_s6 = inlined_call_operand.vmem [shape: f32[4,1,32], index: 6, kind: input, shape index: {}]   ;;  %s2636_s7 = inlined_call_operand.vmem [shape: f32[4,1,32], index: 7, kind: input, shape index: {}]   ;;  %s2637_s8 = inlined_call_operand.vmem [shape: f32[4,1,32], index: 8, kind: input, shape index: {}]   ;;  %s2638_s9 = inlined_call_operand.hbm [shape: bf16[4,32,128], index: 9, kind: input, shape index: {}]   ;;  %s2639_s10 = inlined_call_operand.vmem [shape: f32[1,128], index: 10, kind: input, shape index: {}]   ;;  %s2640_s11 = inlined_call_operand.hbm [shape: f32[8,256], index: 11, kind: output, shape index: {}]  }
   0x1   :  { %2677 = sst [smem:[#allocation37_spill]] %s2630_s1 }
   0x2   :  { %2678 = sst [smem:[#allocation38_spill]] %s2632_s3 }
   0x3   :  { %2679 = sst [smem:[#allocation39_spill]] %s2634_s5 }
   0x4   :  { %2680 = sst [smem:[#allocation40_spill]] %s2635_s6 }
   0x5   :  { %2681 = sst [smem:[#allocation41_spill]] %s2636_s7 }
   0x6   :  { %2682 = sst [smem:[#allocation42_spill]] %s2637_s8 }
   0x7   :  { %2683 = sst [smem:[#allocation43_spill]] %s2639_s10 }
   0x8   :  { %2684 = sst [smem:[#allocation44_spill]] %s2640_s11 }
   0x9   :  { %16 = vsyncpa [#allocation4], 0 }
   0xa   :  { %18 = vsyncpa [#allocation4 + $0x1], 0 }
   0xb   :  { %19 = vsyncpa [#allocation7], 0 }
   0xc   :  { %21 = vsyncpa [#allocation7 + $0x1], 0 }
   0xd   :  { %22 = vsyncpa [#allocation10], 0 }
   0xe   :  { %24 = vsyncpa [#allocation10 + $0x1], 0 }
   0xf   :  { %25 = vsyncpa [#allocation13], 0 }
  0x10   :  { %27 = vsyncpa [#allocation13 + $0x1], 0 }
  0x11   :  { %28 = vsyncpa [#allocation5], 0 }
  0x12   :  { %30 = vsyncpa [#allocation5 + $0x1], 0  ;;  %s2027_s17 = smov 0   ;;  %s2029_s18 = smov 0  }
  0x13   :  { %s2031_s19 = smov 0   ;;  %s2033_s20 = smov 0  }
  0x14   :  { %s2035_s21 = smov 0   ;;  %s2037_s22 = smov 0  }
  0x15   :  { %s2039_s23 = smov 0   ;;  %s2041_s24 = smov 0  }
  0x16   :  { %s2043_s25 = smov 0   ;;  %s2045_s26 = smov 0  }
  0x17   :  { %s2047_s27 = smov 0  }
  0x18 LB: > { %2685 = sst [smem:[#allocation21_spill]] %s1916_s18  ;;  %s2083_s28 = sadd.s32 4294967295, %s1952_s27   ;;  %s1952_s27 = sphi %s2047_s27, %s36_s27   ;;  %s1948_s26 = sphi %s2045_s26, %s2761_s26   ;;  %s1944_s25 = sphi %s2043_s25, %s2760_s25   ;;  %s1940_s24 = sphi %s2041_s24, %s2759_s24   ;;  %s1936_s23 = sphi %s2039_s23, %s2758_s23   ;;  %s1932_s22 = sphi %s2037_s22, %s2764_s22   ;;  %s1928_s21 = sphi %s2035_s21, %s2763_s21   ;;  %s1924_s20 = sphi %s2033_s20, %s2762_s20   ;;  %s1920_s19 = sphi %s2031_s19, %s2756_s19   ;;  %s1916_s18 = sphi %s2029_s18, %s2755_s18   ;;  %s1912_s17 = sphi %s2027_s17, %s2754_s17  }
  0x19   : > { %2686 = sst [smem:[#allocation22_spill]] %s1920_s19  ;;  %s1344_s29 = sadd.s32 4294967294, %s1952_s27  }
  0x1a   : > { %2687 = sst [smem:[#allocation23_spill]] %s1924_s20  ;;  %s48_s30 = sadd.s32 1, %s1944_s25 }
  0x1b   : > { %2688 = sst [smem:[#allocation24_spill]] %s1936_s23  ;;  %s55_s12 = sadd.s32 1, %s1948_s26 }
  0x1c   : > { %2689 = sst [smem:[#allocation25_spill]] %s1940_s24  ;;  %p49_p0 = scmp.ge.s32.totalorder %s48_s30, 4 }
  0x1d   : > { %2690 = sst [smem:[#allocation26_spill]] %s1944_s25  ;;  %s64_s13 = sadd.s32 1, %s1932_s22 }
  0x1e   : > { %2691 = sst [smem:[#allocation27_spill]] %s1948_s26  ;;  %p71_p1 = scmp.ne.s32.totalorder %s1932_s22, %s1928_s21 }
  0x1f   : > { %2692 = sst [smem:[#allocation28_spill]] %s1952_s27  ;;  %p72_p2 = scmp.eq.s32.totalorder %s1952_s27, 0 }
  0x20   : > { %2693 = sst [smem:[#allocation29_spill]] %s2083_s28  ;;  %s2766_s30 = smov (%p49_p0, %s48_s30), 0 }
  0x21   : > { %2694 = sst [smem:[#allocation30_spill]] %s2766_s30  ;;  %s2768_s12 = smov (!%p49_p0, %s55_s12), %s1948_s26 }
  0x22   : > { %p2100_p3 = por %p72_p2, %p71_p1  ;;  %p2643_p4 = scmp.ne.s32.totalorder %s1928_s21, %s1924_s20 }
  0x23   : > { %p57_p5 = scmp.ge.s32.totalorder %s2768_s12, 2  ;;  %p78_p6 = scmp.eq.s32.totalorder %s2083_s28, 0 }
  0x24   : > { %s139_s15 = ssub.s32 %s1944_s25, %s2766_s30  ;;  %s142_s16 = sadd.s32 1, %s1920_s19 }
  0x25   : > { %s2770_s12 = smov (%p57_p5, %s2768_s12), 0  ;;  %p2117_p7 = por %p78_p6, %p2643_p4 }
  0x26   : > { %2696 = sst [smem:[#allocation31_spill]] %s2770_s12  ;;  %p140_p8 = scmp.eq.s32.totalorder %s139_s15, 0 }
  0x27   : > { %s2697_s11 = scalar_select %p2117_p7, 1, 0 }
  0x28   : > { %s60_s24 = ssub.s32 %s1948_s26, %s2770_s12  ;;  %p149_p9 = scmp.ne.s32.totalorder %s1920_s19, %s1916_s18 }
  0x29   : > { %p62_p10 = scmp.eq.s32.totalorder %s60_s24, 0  ;;  %p155_p11 = scmp.ne.s32.totalorder %s1916_s18, %s1912_s17 }
  0x2a   : > { %s2128_s30 = scalar_select %p140_p8, %s1920_s19, %s142_s16  }
  0x2b   : > { %s2131_s10 = scalar_select %p62_p10, %s1932_s22, %s64_s13  }
  0x2c   : > { %2698 = sst [smem:[#allocation32_spill]] %s2128_s30  ;;  %p2135_p12 = por %p149_p9, %p72_p2 }
  0x2d   : > { %2699 = sst [smem:[#allocation33_spill]] %s2131_s10  ;;  %p2141_p13 = por %p155_p11, %p78_p6 }
  0x2e   : > { %s2700_s8 = scalar_select %p2135_p12, 1, 0 }
  0x2f   : > { %s2701_s15 = scalar_select %p2141_p13, 1, 0 }
  0x30   : > { %p358_p0 = scmp.eq.s32.totalorder %s2083_s28, 7  ;;  %p364_p5 = scmp.eq.s32.totalorder %s1344_s29, 7 }
  0x31   : > { %2702 = sst [smem:[#allocation34_spill]] %s2701_s15  ;;  %p2653_p4 = scmp.lt.s32.totalorder %s1952_s27, 8 }
  0x32   : > { %p2150_p7 = por %p358_p0, %p71_p1  ;;  %p2705_p8 = scmp.ne.s32.totalorder %s1928_s21, %s1924_s20 }
  0x33   : > { %s2648_s13 = sand.u32 1, %s1932_s22   ;;  %s2163_s16 = sshll.u32 %s1948_s26, 7 }
  0x34   : > { %s2703_s17 = scalar_select %p2150_p7, 1, 0 }
  0x35   : > { %p2157_p10 = por %p364_p5, %p2705_p8  ;;  %s2167_s12 = sshll.u32 %s2648_s13, 3 }
  0x36   : > { %2704 = sst [smem:[#allocation35_spill]] %s2703_s17  ;;  %p2173_p2 = pnand %p2653_p4, %p2100_p3 }
  0x37   : > { %s2706_s24 = scalar_select %p2157_p10, 1, 0 }
  0x38   : > { %s2708_s29 = scalar_select %p2173_p2, 1, 0 }
  0x39   : > { %2707 = sst [smem:[#allocation36_spill]] %s2706_s24  ;;  %s2178_s10 = sand.u32 1, %s1952_s27  }
  0x3a   : > { %s2709_s1 = sld [smem:[#allocation37_spill]]  ;;  %s411_s14 = scalar_lea.vmem [#allocation6], %s2167_s12 }
  0x3b   : > { %s418_s13 = sshll.u32 %s411_s14, 4  ;;  %p2194_p3 = pneg %p2173_p2  ;;  %s2187_s13 = int_to_ptr.vmem [resolvable:$true] %s418_s13 }
  0x3d   : > { %s2710_s7 = scalar_select %p2194_p3, 1, 0 }
  0x40   : > { %s2184_s26 = scalar_lea.hbm %s2709_s1, %s2163_s16  ;;  %s1613_s6 = scalar_lea.hbm %s2709_s1, 256 }
  0x41   : > { %s1608_s17 = scalar_lea.hbm %s2184_s26, 128  ;;  %p1614_p11 = scmp.lt.u32.totalorder %s2184_s26, %s2709_s1 }
  0x42   : > { %p1609_p1 = scmp.ne.s32.totalorder %s2184_s26, %s1608_s17  ;;  %p1615_p0 = scmp.lt.u32.totalorder %s1613_s6, %s1608_s17 }
  0x43   : > { %p1617_p8 = scmp.lt.u32.totalorder %s1608_s17, %s2184_s26 }
  0x44   : > { %p1611_p6 = pnand %p2194_p3, %p1609_p1  ;;  %p1616_p5 = por %p1615_p0, %p1614_p11 }
  0x46   : > { %p1612_p9 = pneg %p1611_p6  ;;  %p1618_p4 = por %p1617_p8, %p1616_p5 }
  0x48   : > { %p1619_p10 = pnand %p1618_p4, %p1612_p9 }
  0x4a   : > { %1622 = shalt.err (!%p1619_p10)
}
  0x4b   : > { %s1623_s24 = scalar_lea.vmem %s2187_s13, 128  ;;  %s1954_s20 = smov [#allocation6]  }
  0x4c   : > { %p1624_p1 = scmp.ne.s32.totalorder %s2187_s13, %s1623_s24  ;;  %s1628_s30 = sshll.u32 %s1954_s20, 4  ;;  %s1629_s30 = int_to_ptr.vmem [resolvable:$false] %s1628_s30 }
  0x4d   : > { %s1630_s23 = scalar_lea.vmem %s1629_s30, 256  ;;  %p1631_p13 = scmp.lt.s32.totalorder %s2187_s13, %s1629_s30 }
  0x4e   : > { %p1626_p6 = pnand %p1624_p1, %p2194_p3  ;;  %p1632_p12 = scmp.lt.s32.totalorder %s1630_s23, %s1623_s24 }
  0x50   : > { %p1627_p7 = pneg %p1626_p6  ;;  %p1633_p11 = por %p1632_p12, %p1631_p13 }
  0x52   : > { %p1634_p0 = pnand %p1633_p11, %p1627_p7 }
  0x54   : > { %1637 = shalt.err (!%p1634_p0)
}
  0x55   : > { %s2711_s6 = scalar_lea.sflag [#allocation7], %s2178_s10  ;;  %p2712_p4 = scmp.ne.s32.totalorder %s2700_s8, 0 }
  0x56   : > { %1481 = dma.hbm_to_vmem [thread:$0]  (!%p2173_p2), %s2184_s26, 128, %s2187_s13, %s2711_s6  }
  0x57   : > { %p2713_p10 = scmp.lt.s32.totalorder %s1952_s27, 8  ;;  %p1365_p7 = scmp.ge.s32.totalorder %s1952_s27, 1 }
  0x58   : > { %p543_p12 = scmp.lt.s32.totalorder %s1952_s27, 9  ;;  %s445_s24 = sand.u32 1, %s1920_s19  }
  0x59   : > { %p2223_p9 = pnand %p2713_p10, %p2712_p4  ;;  %s2234_s20 = sshll.u32 %s445_s24, 4 }
  0x5a   : > { %p2230_p13 = pnand %p1365_p7, %p543_p12  ;;  %s2237_s30 = sshll.u32 %s1944_s25, 8 }
  0x5b   : > { %s2714_s17 = scalar_select %p2223_p9, 1, 0 }
  0x5c   : > { %s2715_s14 = scalar_select %p2230_p13, 1, 0 }
  0x5d   : > { %s2716_s3 = sld [smem:[#allocation38_spill]]  ;;  %s447_s23 = scalar_lea.vmem [#allocation9], %s2234_s20 }
  0x5e   : > { %s454_s6 = sshll.u32 %s447_s23, 4  ;;  %p2253_p8 = pneg %p2223_p9  ;;  %s2246_s6 = int_to_ptr.vmem [resolvable:$true] %s454_s6 }
  0x60   : > { %s2717_s25 = scalar_select %p2253_p8, 1, 0 }
  0x63   : > { %s2243_s13 = scalar_lea.hbm %s2716_s3, %s2237_s30  ;;  %s1643_s19 = scalar_lea.hbm %s2716_s3, 1024 }
  0x64   : > { %s1638_s24 = scalar_lea.hbm %s2243_s13, 256  ;;  %p1644_p11 = scmp.lt.u32.totalorder %s2243_s13, %s2716_s3 }
  0x65   : > { %p1639_p5 = scmp.ne.s32.totalorder %s2243_s13, %s1638_s24  ;;  %p1645_p0 = scmp.lt.u32.totalorder %s1643_s19, %s1638_s24 }
  0x66   : > { %p1647_p10 = scmp.lt.u32.totalorder %s1638_s24, %s2243_s13 }
  0x67   : > { %p1641_p1 = pnand %p2253_p8, %p1639_p5  ;;  %p1646_p4 = por %p1645_p0, %p1644_p11 }
  0x69   : > { %p1642_p6 = pneg %p1641_p1  ;;  %p1648_p7 = por %p1647_p10, %p1646_p4 }
  0x6b   : > { %p1649_p12 = pnand %p1648_p7, %p1642_p6 }
  0x6d   : > { %1652 = shalt.err (!%p1649_p12)
}
  0x6e   : > { %s1653_s1 = scalar_lea.vmem %s2246_s6, 256  ;;  %s1955_s8 = smov [#allocation9]  }
  0x6f   : > { %p1654_p5 = scmp.ne.s32.totalorder %s2246_s6, %s1653_s1  ;;  %s1658_s26 = sshll.u32 %s1955_s8, 4  ;;  %s1659_s26 = int_to_ptr.vmem [resolvable:$false] %s1658_s26 }
  0x70   : > { %s1660_s27 = scalar_lea.vmem %s1659_s26, 512  ;;  %p1661_p2 = scmp.lt.s32.totalorder %s2246_s6, %s1659_s26 }
  0x71   : > { %p1656_p1 = pnand %p1654_p5, %p2253_p8  ;;  %p1662_p3 = scmp.lt.s32.totalorder %s1660_s27, %s1653_s1 }
  0x73   : > { %p1657_p13 = pneg %p1656_p1  ;;  %p1663_p11 = por %p1662_p3, %p1661_p2 }
  0x75   : > { %p1664_p0 = pnand %p1663_p11, %p1657_p13 }
  0x77   : > { %1667 = shalt.err (!%p1664_p0)
}
  0x78   : > { %s2669_s19 = smov 64   ;;  %s2673_s24 = smov 4  }
  0x79   : > { %s2718_s23 = scalar_lea.sflag [#allocation10], %s2178_s10  ;;  %s2719_s5 = sld [smem:[#allocation39_spill]] }
  0x7a   : > { %1487 = dma.hbm_to_vmem [thread:$0]  (!%p2223_p9), %s2243_s13, 256, %s2246_s6, %s2718_s23, %s2669_s19, %s2669_s19, %s2673_s24  }
  0x7b   : > { %s489_s27 = scalar_lea.vmem [#allocation12], %s2234_s20  ;;  %s2668_s15 = scalar_lea.sflag [#allocation13], %s2178_s10 }
  0x7c   : > { %s496_s3 = sshll.u32 %s489_s27, 4  ;;  %s2288_s3 = int_to_ptr.vmem [resolvable:$true] %s496_s3 }
  0x7f   : > { %s2285_s26 = scalar_lea.hbm %s2719_s5, %s2237_s30  ;;  %s1673_s23 = scalar_lea.hbm %s2719_s5, 1024 }
  0x80   : > { %s1668_s18 = scalar_lea.hbm %s2285_s26, 256  ;;  %p1674_p6 = scmp.lt.u32.totalorder %s2285_s26, %s2719_s5 }
  0x81   : > { %p1669_p2 = scmp.ne.s32.totalorder %s2285_s26, %s1668_s18  ;;  %p1675_p4 = scmp.lt.u32.totalorder %s1673_s23, %s1668_s18 }
  0x82   : > { %p1677_p7 = scmp.lt.u32.totalorder %s1668_s18, %s2285_s26 }
  0x83   : > { %p1671_p3 = pnand %p1669_p2, %p2253_p8  ;;  %p1676_p10 = por %p1675_p4, %p1674_p6 }
  0x85   : > { %p1672_p13 = pneg %p1671_p3  ;;  %p1678_p12 = por %p1677_p7, %p1676_p10 }
  0x87   : > { %p1679_p5 = pnand %p1678_p12, %p1672_p13 }
  0x89   : > { %1682 = shalt.err (!%p1679_p5)
}
  0x8a   : > { %s1683_s27 = scalar_lea.vmem %s2288_s3, 256  ;;  %s1958_s13 = smov [#allocation12]  }
  0x8b   : > { %p1684_p1 = scmp.ne.s32.totalorder %s2288_s3, %s1683_s27  ;;  %s1688_s6 = sshll.u32 %s1958_s13, 4  ;;  %s1689_s6 = int_to_ptr.vmem [resolvable:$false] %s1688_s6 }
  0x8c   : > { %s1690_s1 = scalar_lea.vmem %s1689_s6, 512  ;;  %p1691_p2 = scmp.lt.s32.totalorder %s2288_s3, %s1689_s6 }
  0x8d   : > { %p1686_p11 = pnand %p1684_p1, %p2253_p8  ;;  %p1692_p3 = scmp.lt.s32.totalorder %s1690_s1, %s1683_s27 }
  0x8f   : > { %p1687_p0 = pneg %p1686_p11  ;;  %p1693_p6 = por %p1692_p3, %p1691_p2 }
  0x91   : > { %p1694_p4 = pnand %p1693_p6, %p1687_p0 }
  0x93   : > { %1697 = shalt.err (!%p1694_p4)
}
  0x94   : > { %1493 = dma.hbm_to_vmem [thread:$0]  (!%p2223_p9), %s2285_s26, 256, %s2288_s3, %s2668_s15, %s2669_s19, %s2669_s19, %s2673_s24  }
  0x95   : > { %s2321_s8 = scalar_lea.hbm %s2629_s0, %s2163_s16  ;;  %s391_s27 = scalar_lea.vmem [#allocation3], %s2167_s12 }
  0x96   : > { %s400_s13 = sshll.u32 %s391_s27, 4  ;;  %s2330_s5 = scalar_lea.hbm %s2631_s2, %s2163_s16  ;;  %s2324_s13 = int_to_ptr.vmem [resolvable:$true] %s400_s13 }
  0x97   : > { %s2720_s28 = sand.u32 1, %s1932_s22   ;;  %s1698_s26 = scalar_lea.hbm %s2321_s8, 128 }
  0x98   : > { %s388_s3 = scalar_lea.sflag [#allocation4], %s2720_s28  ;;  %p1699_p13 = scmp.ne.s32.totalorder %s2321_s8, %s1698_s26 }
  0x99   : > { %p2721_p10 = scmp.ne.s32.totalorder %s2710_s7, 0  ;;  %s1703_s15 = scalar_lea.hbm %s2629_s0, 256 }
  0x9a   : > { %p1704_p5 = scmp.lt.u32.totalorder %s2321_s8, %s2629_s0  ;;  %p1705_p1 = scmp.lt.u32.totalorder %s1703_s15, %s1698_s26 }
  0x9b   : > { %p1701_p7 = pnand %p1699_p13, %p2721_p10  ;;  %p1707_p0 = scmp.lt.u32.totalorder %s1698_s26, %s2321_s8 }
  0x9c   : > { %p1706_p11 = por %p1705_p1, %p1704_p5 }
  0x9d   : > { %p1702_p12 = pneg %p1701_p7 }
  0x9e   : > { %p1708_p2 = por %p1707_p0, %p1706_p11 }
  0xa0   : > { %p1709_p3 = pnand %p1708_p2, %p1702_p12 }
  0xa2   : > { %1712 = shalt.err (!%p1709_p3)
}
  0xa3   : > { %s1713_s28 = scalar_lea.vmem %s2324_s13, 128  ;;  %s1959_s16 = smov [#allocation3]  }
  0xa4   : > { %p1714_p6 = scmp.ne.s32.totalorder %s2324_s13, %s1713_s28  ;;  %s1718_s6 = sshll.u32 %s1959_s16, 4  ;;  %s1719_s6 = int_to_ptr.vmem [resolvable:$false] %s1718_s6 }
  0xa5   : > { %s1720_s19 = scalar_lea.vmem %s1719_s6, 256  ;;  %p1721_p7 = scmp.lt.s32.totalorder %s2324_s13, %s1719_s6 }
  0xa6   : > { %p1716_p4 = pnand %p1714_p6, %p2721_p10  ;;  %p1722_p9 = scmp.lt.s32.totalorder %s1720_s19, %s1713_s28 }
  0xa8   : > { %p1717_p13 = pneg %p1716_p4  ;;  %p1723_p5 = por %p1722_p9, %p1721_p7 }
  0xaa   : > { %p1724_p1 = pnand %p1723_p5, %p1717_p13 }
  0xac   : > { %1727 = shalt.err (!%p1724_p1)
}
  0xad   : > { %p2722_p12 = scmp.ne.s32.totalorder %s2708_s29, 0  ;;  %s429_s15 = scalar_lea.vmem [#allocation8], %s2167_s12 }
  0xae   : > { %s436_s1 = sshll.u32 %s429_s15, 4  ;;  %s2360_s23 = scalar_lea.hbm %s2633_s4, %s2237_s30  ;;  %s437_s1 = int_to_ptr.vmem [resolvable:$true] %s436_s1 }
  0xaf   : > { %1478 = dma.hbm_to_vmem [thread:$0]  (!%p2722_p12), %s2321_s8, 128, %s2324_s13, %s388_s3  }
  0xb0   : > { %s1728_s27 = scalar_lea.hbm %s2330_s5, 128  ;;  %s1733_s6 = scalar_lea.hbm %s2631_s2, 256 }
  0xb1   : > { %p1729_p9 = scmp.ne.s32.totalorder %s2330_s5, %s1728_s27  ;;  %p1734_p2 = scmp.lt.u32.totalorder %s2330_s5, %s2631_s2 }
  0xb2   : > { %p1735_p3 = scmp.lt.u32.totalorder %s1733_s6, %s1728_s27  ;;  %p1737_p4 = scmp.lt.u32.totalorder %s1728_s27, %s2330_s5 }
  0xb3   : > { %p1731_p11 = pnand %p1729_p9, %p2721_p10 }
  0xb4   : > { %p1736_p6 = por %p1735_p3, %p1734_p2 }
  0xb5   : > { %p1732_p0 = pneg %p1731_p11 }
  0xb6   : > { %p1738_p13 = por %p1737_p4, %p1736_p6 }
  0xb8   : > { %p1739_p7 = pnand %p1738_p13, %p1732_p0 }
  0xba   : > { %1742 = shalt.err (!%p1739_p7)
}
  0xbb   : > { %s1743_s12 = scalar_lea.vmem %s437_s1, 128  ;;  %s1960_s8 = smov [#allocation8]  }
  0xbc   : > { %p1744_p5 = scmp.ne.s32.totalorder %s437_s1, %s1743_s12  ;;  %s1748_s13 = sshll.u32 %s1960_s8, 4  ;;  %s1749_s13 = int_to_ptr.vmem [resolvable:$false] %s1748_s13 }
  0xbd   : > { %s1750_s3 = scalar_lea.vmem %s1749_s13, 256  ;;  %p1751_p11 = scmp.lt.s32.totalorder %s437_s1, %s1749_s13 }
  0xbe   : > { %p1746_p1 = pnand %p1744_p5, %p2721_p10  ;;  %p1752_p8 = scmp.lt.s32.totalorder %s1750_s3, %s1743_s12 }
  0xc0   : > { %p1747_p9 = pneg %p1746_p1  ;;  %p1753_p12 = por %p1752_p8, %p1751_p11 }
  0xc2   : > { %p1754_p2 = pnand %p1753_p12, %p1747_p9 }
  0xc4   : > { %1757 = shalt.err (!%p1754_p2)
}
  0xc5   : > { %p2723_p3 = scmp.ne.s32.totalorder %s2708_s29, 0  ;;  %s2724_s24 = scalar_lea.sflag [#allocation7], %s2178_s10 }
  0xc6   : > { %s468_s7 = scalar_lea.vmem [#allocation11], %s2234_s20  ;;  %s2388_s27 = scalar_lea.hbm %s2638_s9, %s2237_s30 }
  0xc7   : > { %1484 = dma.hbm_to_vmem [thread:$0]  (!%p2723_p3), %s2330_s5, 128, %s437_s1, %s2724_s24  }
  0xc8   : > { %s475_s15 = sshll.u32 %s468_s7, 4  ;;  %s1758_s29 = scalar_lea.hbm %s2360_s23, 256  ;;  %s2382_s15 = int_to_ptr.vmem [resolvable:$true] %s475_s15 }
  0xc9   : > { %p1759_p8 = scmp.ne.s32.totalorder %s2360_s23, %s1758_s29  ;;  %p2725_p10 = scmp.ne.s32.totalorder %s2717_s25, 0 }
  0xca   : > { %s1763_s6 = scalar_lea.hbm %s2633_s4, 1024  ;;  %p1764_p6 = scmp.lt.u32.totalorder %s2360_s23, %s2633_s4 }
  0xcb   : > { %p1761_p12 = pnand %p1759_p8, %p2725_p10  ;;  %p1765_p4 = scmp.lt.u32.totalorder %s1763_s6, %s1758_s29 }
  0xcc   : > { %p1767_p7 = scmp.lt.u32.totalorder %s1758_s29, %s2360_s23 }
  0xcd   : > { %p1762_p0 = pneg %p1761_p12  ;;  %p1766_p13 = por %p1765_p4, %p1764_p6 }
  0xcf   : > { %p1768_p5 = por %p1767_p7, %p1766_p13 }
  0xd1   : > { %p1769_p1 = pnand %p1768_p5, %p1762_p0 }
  0xd3   : > { %1772 = shalt.err (!%p1769_p1)
}
  0xd4   : > { %s1773_s30 = scalar_lea.vmem %s2382_s15, 256  ;;  %s1961_s1 = smov [#allocation11]  }
  0xd5   : > { %p1774_p9 = scmp.ne.s32.totalorder %s2382_s15, %s1773_s30  ;;  %s1778_s12 = sshll.u32 %s1961_s1, 4  ;;  %s1779_s12 = int_to_ptr.vmem [resolvable:$false] %s1778_s12 }
  0xd6   : > { %s1780_s8 = scalar_lea.vmem %s1779_s12, 512  ;;  %p1781_p3 = scmp.lt.s32.totalorder %s2382_s15, %s1779_s12 }
  0xd7   : > { %p1776_p11 = pnand %p1774_p9, %p2725_p10  ;;  %p1782_p8 = scmp.lt.s32.totalorder %s1780_s8, %s1773_s30 }
  0xd9   : > { %p1777_p2 = pneg %p1776_p11  ;;  %p1783_p12 = por %p1782_p8, %p1781_p3 }
  0xdb   : > { %p1784_p6 = pnand %p1783_p12, %p1777_p2 }
  0xdd   : > { %1787 = shalt.err (!%p1784_p6)
}
  0xde   : > { %p2726_p0 = scmp.ne.s32.totalorder %s2714_s17, 0  ;;  %s2727_s13 = smov 4  }
  0xdf   : > { %s2728_s3 = smov 64   ;;  %s2729_s24 = scalar_lea.sflag [#allocation10], %s2178_s10 }
  0xe0   : > { %1490 = dma.hbm_to_vmem [thread:$0]  (!%p2726_p0), %s2360_s23, 256, %s2382_s15, %s2729_s24, %s2728_s3, %s2728_s3, %s2727_s13  }
  0xe1   : > { %s528_s7 = scalar_lea.vmem [#allocation14], %s2234_s20  ;;  %s1788_s18 = scalar_lea.hbm %s2388_s27, 256 }
  0xe2   : > { %s535_s26 = sshll.u32 %s528_s7, 4  ;;  %p1789_p4 = scmp.ne.s32.totalorder %s2388_s27, %s1788_s18  ;;  %s2417_s26 = int_to_ptr.vmem [resolvable:$true] %s535_s26 }
  0xe3   : > { %s1793_s16 = scalar_lea.hbm %s2638_s9, 1024  ;;  %p1794_p5 = scmp.lt.u32.totalorder %s2388_s27, %s2638_s9 }
  0xe4   : > { %p1791_p13 = pnand %p1789_p4, %p2725_p10  ;;  %p1795_p1 = scmp.lt.u32.totalorder %s1793_s16, %s1788_s18 }
  0xe5   : > { %p1797_p11 = scmp.lt.u32.totalorder %s1788_s18, %s2388_s27 }
  0xe6   : > { %p1792_p7 = pneg %p1791_p13  ;;  %p1796_p9 = por %p1795_p1, %p1794_p5 }
  0xe8   : > { %p1798_p2 = por %p1797_p11, %p1796_p9 }
  0xea   : > { %p1799_p3 = pnand %p1798_p2, %p1792_p7 }
  0xec   : > { %1802 = shalt.err (!%p1799_p3)
}
  0xed   : > { %s1803_s20 = scalar_lea.vmem %s2417_s26, 256  ;;  %s1962_s23 = smov [#allocation14]  }
  0xee   : > { %p1804_p8 = scmp.ne.s32.totalorder %s2417_s26, %s1803_s20  ;;  %s1808_s15 = sshll.u32 %s1962_s23, 4  ;;  %s1809_s15 = int_to_ptr.vmem [resolvable:$false] %s1808_s15 }
  0xef   : > { %s1810_s5 = scalar_lea.vmem %s1809_s15, 512  ;;  %p1811_p4 = scmp.lt.s32.totalorder %s2417_s26, %s1809_s15 }
  0xf0   : > { %p1806_p12 = pnand %p1804_p8, %p2725_p10  ;;  %p1812_p13 = scmp.lt.s32.totalorder %s1810_s5, %s1803_s20 }
  0xf2   : > { %p1807_p6 = pneg %p1806_p12  ;;  %p1813_p5 = por %p1812_p13, %p1811_p4 }
  0xf4   : > { %p1814_p1 = pnand %p1813_p5, %p1807_p6 }
  0xf6   : > { %1817 = shalt.err (!%p1814_p1)
}
  0xf7   : > { %s2730_s30 = scalar_lea.sflag [#allocation13], %s2178_s10  ;;  %p2731_p10 = scmp.ne.s32.totalorder %s2715_s14, 0 }
  0xf8   : > { %1496 = dma.hbm_to_vmem [thread:$0]  (!%p2726_p0), %s2388_s27, 256, %s2417_s26, %s2730_s30, %s2728_s3, %s2728_s3, %s2727_s13  }
  0xf9   : > { %547 = sbr.rel (%p2731_p10) target bundleno = 1530 (0x5fa), region = 64  ;;  %s2448_s25 = sand.u32 (!%p2731_p10), 1, %s1928_s21  }
  0xfa   : > { %s2451_s1 = sshll.u32 (!%p2731_p10), %s2448_s25, 3  ;;  %s550_s17 = scalar_lea.sflag (!%p2731_p10), [#allocation4], %s2448_s25 }
  0xfb   : > { %s553_s12 = scalar_lea.vmem (!%p2731_p10), [#allocation3], %s2451_s1  ;;  %p2732_p7 = scmp.ne.s32.totalorder (!%p2731_p10), %s2697_s11, 0 }
 0x100   : > { %1891 = dma.done.wait (%p2732_p7), %s550_s17, 128  }
 0x101   : > { %1893 = vsyncadd (%p2732_p7), %s550_s17, 4294967168  ;;  %s2733_s10 = sld [smem:[#allocation29_spill]]  ;;  %s562_s8 = scalar_lea.vmem [#allocation6], %s2451_s1 }
 0x107   : > { %s558_s14 = sand.u32 1, %s2733_s10  }
 0x108   : > { %s559_s27 = scalar_lea.sflag [#allocation7], %s558_s14 }
 0x109   : > { %1895 = dma.done.wait (%p2732_p7), %s559_s27, 256  }
 0x10a   : > { %1897 = vsyncadd (%p2732_p7), %s559_s27, 4294967040  ;;  %s2734_s13 = sld [smem:[#allocation21_spill]]  ;;  %s2735_s3 = sld [smem:[#allocation34_spill]] }
 0x10b   : > { %s571_s26 = scalar_lea.vmem [#allocation8], %s2451_s1  ;;  %s577_s18 = scalar_lea.sflag [#allocation10], %s558_s14 }
 0x110   : > { %s578_s24 = sand.u32 1, %s2734_s13   ;;  %p2736_p0 = scmp.ne.s32.totalorder %s2735_s3, 0 }
 0x111   : > { %s2466_s7 = sshll.u32 %s578_s24, 4 }
 0x112   : > { %s580_s29 = scalar_lea.vmem [#allocation9], %s2466_s7 }
 0x113   : > { %1899 = dma.done.wait (%p2736_p0), %s577_s18, 512  }
 0x114   : > { %1901 = vsyncadd (%p2736_p0), %s577_s18, 4294966784  ;;  %s589_s11 = scalar_lea.vmem [#allocation11], %s2466_s7  ;;  %s595_s28 = scalar_lea.sflag [#allocation13], %s558_s14 }
 0x115   : > { %s598_s16 = scalar_lea.vmem [#allocation12], %s2466_s7 }
 0x116   : > { %1903 = dma.done.wait (%p2736_p0), %s595_s28, 512  }
 0x117   : > { %1905 = vsyncadd (%p2736_p0), %s595_s28, 4294966784  ;;  %s2737_s6 = sld [smem:[#allocation24_spill]]  ;;  %s2738_s15 = sld [smem:[#allocation40_spill]] }
 0x118   : > { %s2739_s10 = sld [smem:[#allocation41_spill]]  ;;  %s2740_s3 = sld [smem:[#allocation42_spill]] }
 0x119   : > { %s607_s18 = scalar_lea.vmem [#allocation14], %s2466_s7  ;;  %s684_s28 = scalar_lea.vmem [#allocation15], %s2451_s1 }
 0x11d   : > { %p685_p9 = scmp.lt.s32.totalorder %s2737_s6, 3  ;;  %p1374_p11 = scmp.ne.s32.totalorder %s2737_s6, 0 }
 0x11e   : > { %v1963_v0 = vmov (!%p1374_p11), 0.0  }
 0x11f   : > { %s2482_s19 = scalar_select %p685_p9, %s2737_s6, 3 }
 0x120   : > { %698 = sbr.rel (%p1374_p11) target bundleno = 295 (0x127), region = 96  ;;  %699 = vst [vmem:[#allocation2] sm:$0xff] (!%p1374_p11), %v1963_v0 }
 0x121   : > { %s687_s5 = scalar_lea.vmem %s2738_s15, %s2482_s19  ;;  %s690_s14 = scalar_lea.vmem %s2739_s10, %s2482_s19 }
 0x122   : > { %s693_s24 = scalar_lea.vmem %s2740_s3, %s2482_s19 }
 0x127 PF: > { %v1596_v1 = vld [vmem:[%s589_s11] sm:$0xff]   ;;  %v1964_v2 = vmov 0.0   ;;  %vm1965_vm0 = vmmov 0   ;;  %v1598_v4 = vld [vmem:[%s589_s11 + $0x8] sm:$0xff]   ;;  %vm898_vm1 = vcmask 261120   ;;  %vm945_vm2 = vcmask 64512  }
 0x128   : > { %1423 = vmatprep.subr.bf16.mxu1 %v1964_v2  ;;  %1415 = vmatprep.subr.bf16.mxu0 %v1964_v2  ;;  %v1597_v3 = vld [vmem:[%s580_s29] sm:$0xff]   ;;  %v1599_v5 = vld [vmem:[%s580_s29 + $0x8] sm:$0xff]   ;;  %vm962_vm3 = vcmask 1043456   ;;  %s2744_s19 = sld [smem:[#allocation24_spill]] }
 0x129   : > { %1424 = vmatpush3.bf16.xpose.msra.mxu1 %v1596_v1  ;;  %1427 = vmatprep.mubr.msk.bf16.mxu1 %vm1965_vm0, %v1964_v2  ;;  %v702_v6 = vld [vmem:[%s562_s8] sm:$0xff]  ;;  %v700_v7 = vld [vmem:[%s553_s12] sm:$0xff] }
 0x12a   : > { %1416 = vmatpush3.bf16.xpose.msra.mxu0 %v1597_v3  ;;  %1425 = vmatprep.subr.bf16.mxu1 %v1964_v2  ;;  %v703_v8 = vpack.c.bf16 %v702_v6, %v702_v6  ;;  %v701_v9 = vpack.c.bf16 %v700_v7, %v700_v7  ;;  %v1378_v10 = vld [vmem:[%s690_s14] ss:$0 sm:$0xff]  ;;  %v1600_v26 = vld [vmem:[%s598_s16] sm:$0xff]   ;;  %v704_v28 = vld [vmem:[%s571_s26] sm:$0xff] }
 0x12b   : > { %1417 = vmatprep.subr.bf16.mxu0 %v1964_v2  ;;  %1419 = vmatprep.mubr.msk.bf16.mxu0 %vm1965_vm0, %v1964_v2  ;;  %v1375_v11 = vld [vmem:[%s687_s5] ss:$0 sm:$0xff]  ;;  %v705_v29 = vpack.c.bf16 %v704_v28, %v704_v28  ;;  %v1602_v48 = vld [vmem:[%s607_s18] sm:$0xff]  }
 0x12c   : > { %v1601_v27 = vld [vmem:[%s598_s16 + $0x8] sm:$0xff]  }
 0x12d   : > { %v1381_v43 = vld [vmem:[%s693_s24] ss:$0 sm:$0xff] }
 0x12e   : > { %v1603_v53 = vld [vmem:[%s607_s18 + $0x8] sm:$0xff]   ;;  %p1389_p2 = scmp.ne.s32.totalorder %s2744_s19, 3 }
 0x12f   : > { %v1006_v59 = vld [vmem:[#allocation2] sm:$0xff]  ;;  %s2745_s5 = sld [smem:[#allocation43_spill]] (!%p1389_p2) }
 0x131   : > { %1426 = vmatpush3.bf16.xpose.msra.mxu1 %v1598_v4 }
 0x132   : > { %1418 = vmatpush3.bf16.xpose.msra.mxu0 %v1599_v5  ;;  %1439 = vmatprep.subr.bf16.mxu1 %v1964_v2 }
 0x133   : > { %1431 = vmatprep.subr.bf16.mxu0 %v1964_v2 }
 0x138   : > { %1428 = vmatmul.mubr.bf16.vlgmr.msra.gmra.mrb[0].mxu1 %v703_v8 }
 0x139   : > { %1420 = vmatmul.mubr.bf16.vlgmr.msra.gmra.mrb[0].mxu0 %v701_v9  ;;  %1441 = vmatprep.mubr.msk.bf16.mxu1 %vm1965_vm0, %v1964_v2 }
 0x13a   : > { %1435 = vmatprep.mubr.msk.bf16.mxu0 %vm1965_vm0, %v1964_v2  ;;  %1432 = vmatpush3.bf16.xpose.msra.mxu0 %v1600_v26 }
 0x13b   : > { %1433 = vmatprep.subr.bf16.mxu0 %v1964_v2 }
 0x142   : > { %1434 = vmatpush3.bf16.xpose.msra.mxu0 %v1601_v27 }
 0x143   : > { %1451 = vmatprep.subr.bf16.mxu0 %v1964_v2 }
 0x149   : > { %1436 = vmatmul.mubr.bf16.vlgmr.msra.gmra.mrb[4].mxu0 %v705_v29 }
 0x14a   : > { %1455 = vmatprep.mubr.msk.bf16.mxu0 %vm1965_vm0, %v1964_v2  ;;  %1452 = vmatpush3.bf16.msra.mxu0 %v1602_v48 }
 0x14b   : > { %1453 = vmatprep.subr.bf16.mxu0 %v1964_v2 }
 0x14e   : > { %1454 = vmatpush3.bf16.msra.mxu0 %v1603_v53 }
 0x20b   : > { %v826_v12 = vpop.f32.mrb[0].mxu1 }
 0x20c   : > { %v827_v13 = vadd.f32 %v1378_v10, %v826_v12  ;;  %v1429_v14 = vpop.f32.mrb[1].mxu1  ;;  %v763_v15 = vpop.f32.mrb[0].mxu0 }
 0x20d   : > { %v829_v16 = vpop.f32.mrb[2].mxu1  ;;  %v764_v17 = vadd.f32 %v1375_v11, %v763_v15  ;;  %v1421_v18 = vpop.f32.mrb[1].mxu0 }
 0x20e   : > { %v897_v19 = vpack.c.bf16 %v827_v13, %v827_v13  ;;  %v1430_v20 = vpop.f32.mrb[3].mxu1  ;;  %v766_v21 = vpop.f32.mrb[2].mxu0 }
 0x20f   : > { %v1422_v22 = vpop.f32.mrb[3].mxu0  ;;  %v895_v24 = vmul.f32 0.17677669, %v764_v17 }
 0x210   : > { %v903_v23 = vsel %vm898_vm1, %v897_v19, 0 }
 0x211   : > { %1440 = vmatpush3.bf16.xpose.msra.mxu1 %v903_v23  ;;  %v896_v25 = vpack.c.bf16 %v895_v24, %v895_v24 }
 0x212   : > { %1445 = vmatprep.subr.bf16.mxu1 %v1964_v2 }
 0x218   : > { %1442 = vmatmul.mubr.msk.bf16.vlgmr.msra.gmra.mrb[4].mxu1 %vm898_vm1, %v896_v25 }
 0x219   : > { %1447 = vmatprep.mubr.msk.bf16.mxu1 %vm1965_vm0, %v1964_v2  ;;  %v1390_v2 = vld [vmem:[%s2745_s5] ss:$0 sm:$0xff] (!%p1389_p2) }
 0x21c   : > { %v889_v40 = vpop.f32.mrb[4].mxu0 }
 0x21d   : > { %v1437_v41 = vpop.f32.mrb[5].mxu0  ;;  %v890_v45 = vadd.f32 %v1381_v43, %v889_v40 }
 0x21e   : > { %v892_v42 = vpop.f32.mrb[6].mxu0 }
 0x21f   : > { %v1438_v44 = vpop.f32.mrb[7].mxu0  ;;  %v958_v46 = vpack.c.bf16 %v890_v45, %v890_v45 }
 0x221   : > { %v964_v47 = vsel %vm962_vm3, %v958_v46, 0 }
 0x222   : > { %1446 = vmatpush3.bf16.msra.mxu1 %v964_v47 }
 0x2eb   : > { %v939_v30 = vpop.f32.mrb[4].mxu1 }
 0x2ec   : > { %v1443_v31 = vpop.f32.mrb[5].mxu1  ;;  %v946_v32 = vsel %vm945_vm2, %v939_v30, -inf }
 0x2ed   : > { %947 = vmax.xlane.f32.xlu0 %v946_v32  ;;  %v942_v33 = vpop.f32.mrb[6].mxu1 }
 0x2ee   : > { %v1444_v34 = vpop.f32.mrb[7].mxu1 }
 0x37a   : > { %v948_v35 = vpop.xlane.xlu0 %947 }
 0x37b   : > { %v949_v36 = vsub.f32 %v939_v30, %v948_v35 }
 0x37d   : > { %v950_v37 = vmul.f32 1.442695, %v949_v36 }
 0x37f   : > { %1604 = vpow2.f32 %v950_v37 }
 0x389   : > { %v1605_v38 = vpop.eup %1604 }
 0x38a   : > { %v952_v39 = vsel %vm945_vm2, %v1605_v38, 0.0 }
 0x38b   : > { %953 = vadd.xlane.f32.xlu0 %v952_v39 }
 0x418   : > { %v954_v49 = vpop.xlane.xlu0 %953 }
 0x419   : > { %1606 = vrcp.f32 %v954_v49 }
 0x423   : > { %v1607_v50 = vpop.eup %1606 }
 0x424   : > { %v956_v51 = vmul.f32 %v1607_v50, %v1605_v38 }
 0x426   : > { %v957_v52 = vpack.c.bf16 %v956_v51, %v956_v51 }
 0x428   : > { %1448 = vmatmul.mubr.msk.bf16.vlgmr.msra.gmra.mrb[8].mxu1 %vm945_vm2, %v957_v52 }
 0x4fb   : > { %v1000_v54 = vpop.f32.mrb[8].mxu1 }
 0x4fc   : > { %v1007_v55 = vpack.c.bf16 %v1000_v54, %v1000_v54  ;;  %v1449_v56 = vpop.f32.mrb[9].mxu1 }
 0x4fd   : > { %v1003_v57 = vpop.f32.mrb[10].mxu1 }
 0x4fe   : > { %v1450_v58 = vpop.f32.mrb[11].mxu1  ;;  %1456 = vmatmul.mubr.msk.bf16.vlgmr.msra.gmra.mrb[8].mxu0 %vm898_vm1, %v1007_v55 }
 0x5ce   : > { %1072 = sbr.rel (%p1389_p2) target bundleno = 1503 (0x5df), region = 100 }
 0x5d1   : > { %v1061_v60 = vpop.f32.mrb[8].mxu0 }
 0x5d2   : > { %v1067_v61 = vadd.f32 %v1061_v60, %v1006_v59  ;;  %v1457_v62 = vpop.f32.mrb[9].mxu0 }
 0x5d3   : > { %v1064_v63 = vpop.f32.mrb[10].mxu0 }
 0x5d4   : > { %1068 = vst [vmem:[#allocation2] sm:$0xff] %v1067_v61  ;;  %v1458_v0 = vpop.f32.mrb[11].mxu0 }
 0x5db   : > { %v1073_v1 = vld [vmem:[#allocation2] sm:$0xff] }
 0x5dc   : > { %v1081_v3 = vadd.f32 %v1390_v2, %v1073_v1 }
 0x5de   : > { %1082 = vst [vmem:[%s684_s28] sm:$0xff] %v1081_v3 }
 0x5df PF: > { %s2746_s30 = sld [smem:[#allocation25_spill]]  ;;  %s2747_s17 = sld [smem:[#allocation35_spill]] }
 0x5e0   : > { %s2748_s13 = sld [smem:[#allocation44_spill]]  ;;  %s1099_s24 = sshll.u32 %s684_s28, 4  ;;  %s1100_s24 = int_to_ptr.vmem [resolvable:$true] %s1099_s24 }
 0x5e1   : > { %s1084_s18 = scalar_lea.sflag [#allocation5], %s2448_s25  ;;  %s1818_s29 = scalar_lea.vmem %s1100_s24, 128 }
 0x5e2   : > { %p1819_p3 = scmp.ne.s32.totalorder %s1100_s24, %s1818_s29  ;;  %s1966_s11 = smov [#allocation15]  }
 0x5e3   : > { %s1822_s8 = sshll.u32 %s1966_s11, 4  ;;  %s1823_s8 = int_to_ptr.vmem [resolvable:$false] %s1822_s8 }
 0x5e4   : > { %s1824_s12 = scalar_lea.vmem %s1823_s8, 256  ;;  %p1825_p4 = scmp.lt.s32.totalorder %s1100_s24, %s1823_s8 }
 0x5e5   : > { %s1392_s10 = sshll.u32 %s2746_s30, 7  ;;  %p2749_p8 = scmp.ne.s32.totalorder %s2747_s17, 0 }
 0x5e6   : > { %s2570_s3 = scalar_lea.hbm %s2748_s13, %s1392_s10  ;;  %p1826_p13 = scmp.lt.s32.totalorder %s1824_s12, %s1818_s29 }
 0x5e7   : > { %p1820_p12 = pnand %p1819_p3, %p2749_p8 }
 0x5e8   : > { %p1827_p5 = por %p1826_p13, %p1825_p4 }
 0x5e9   : > { %p1821_p6 = pneg %p1820_p12 }
 0x5eb   : > { %p1828_p1 = pnand %p1827_p5, %p1821_p6 }
 0x5ed   : > { %1831 = shalt.err (!%p1828_p1)
}
 0x5ee   : > { %s1832_s25 = scalar_lea.hbm %s2570_s3, 128  ;;  %s1836_s6 = scalar_lea.hbm %s2748_s13, 256 }
 0x5ef   : > { %p1833_p10 = scmp.ne.s32.totalorder %s2570_s3, %s1832_s25  ;;  %p1837_p9 = scmp.lt.u32.totalorder %s2570_s3, %s2748_s13 }
 0x5f0   : > { %p1838_p11 = scmp.lt.u32.totalorder %s1836_s6, %s1832_s25  ;;  %p1840_p3 = scmp.lt.u32.totalorder %s1832_s25, %s2570_s3 }
 0x5f1   : > { %p1834_p7 = pnand %p1833_p10, %p2749_p8 }
 0x5f2   : > { %p1839_p2 = por %p1838_p11, %p1837_p9 }
 0x5f3   : > { %p1835_p0 = pneg %p1834_p7 }
 0x5f4   : > { %p1841_p12 = por %p1840_p3, %p1839_p2 }
 0x5f6   : > { %p1842_p6 = pnand %p1841_p12, %p1835_p0 }
 0x5f8   : > { %1845 = shalt.err (!%p1842_p6)
}
 0x5f9   : > { %1473 = dma.vmem_to_hbm [thread:$0]  (%p2749_p8), %s1100_s24, 128, %s2570_s3, %s1084_s18  }
 0x5fa PF: > { %s2750_s16 = sld [smem:[#allocation28_spill]]  ;;  %s2751_s23 = sld [smem:[#allocation23_spill]] }
 0x5fb   : > { %s2752_s19 = sld [smem:[#allocation36_spill]] }
 0x600   : > { %p1502_p4 = scmp.ge.s32.totalorder %s2750_s16, 2  ;;  %s1111_s7 = sand.u32 1, %s2751_s23  }
 0x601   : > { %p2753_p13 = scmp.ne.s32.totalorder %s2752_s19, 0  ;;  %s1112_s15 = scalar_lea.sflag [#allocation5], %s1111_s7 }
 0x603   : > { %p1498_p5 = pnand %p1502_p4, %p2753_p13 }
 0x605   : > { %1907 = dma.done.wait (!%p1498_p5), %s1112_s15, 128  }
 0x606   : > { %1909 = vsyncadd (!%p1498_p5), %s1112_s15, 4294967168  ;;  %s36_s27 = sadd.s32 1, %s2750_s16   ;;  %s2754_s17 = sld [smem:[#allocation21_spill]] }
 0x607   : > { %p33_p1 = scmp.ge.s32.totalorder %s36_s27, 10   ;;  %s2755_s18 = sld [smem:[#allocation22_spill]] }
 0x608   : > { %s2756_s19 = sld [smem:[#allocation32_spill]]  ;;  %s2757_s5 = sld [smem:[#allocation33_spill]] }
 0x609   : > { %s2758_s23 = sld [smem:[#allocation26_spill]]  ;;  %s2759_s24 = sld [smem:[#allocation27_spill]] }
 0x60a   : > { %s2760_s25 = sld [smem:[#allocation30_spill]]  ;;  %s2761_s26 = sld [smem:[#allocation31_spill]] }
 0x60b   : > { %s2762_s20 = smov %s1928_s21  ;;  %s2763_s21 = smov %s1932_s22 }
 0x60c   :  { %35 = sbr.rel (!%p33_p1) target bundleno = 24 (0x18), region = 198 }
 0x60e   : > { %s2764_s22 = smov %s2757_s5 }
 0x613   :  { %1117 = vsyncpa [#allocation4], 1 }
 0x614   :  { %1119 = vsyncpa [#allocation4 + $0x1], 1 }
 0x615   :  { %1120 = vsyncpa [#allocation7], 1 }
 0x616   :  { %1122 = vsyncpa [#allocation7 + $0x1], 1 }
 0x617   :  { %1123 = vsyncpa [#allocation10], 1 }
 0x618   :  { %1125 = vsyncpa [#allocation10 + $0x1], 1 }
 0x619   :  { %1126 = vsyncpa [#allocation13], 1 }
 0x61a   :  { %1128 = vsyncpa [#allocation13 + $0x1], 1 }
 0x61b   :  { %1129 = vsyncpa [#allocation5], 1 }
 0x61c   :  { %1131 = vsyncpa [#allocation5 + $0x1], 1 }

</bundles_post_ra>
